<compile_context>
chip_gen: v6e
topology: v6e:2x2x1
jax: 0.10.0
libtpu: 0.0.40
codegen_flags: <defaults>
</compile_context>

<pallas_src>
import math

import jax
import jax.numpy as jnp
from jax.experimental import pallas as pl
from jax.experimental.pallas import tpu as pltpu


def _projection_kernel(x_ref, w_ref, b_ref, o_ref):
    # x_ref: (input_dim, S_tile)   activations, S on the lane axis
    # w_ref: (output_dim, input_dim)  folded weight (W1 @ W2)^T
    # b_ref: (output_dim, 1)          folded bias
    y = jnp.dot(w_ref[...], x_ref[...], preferred_element_type=jnp.float32)
    o_ref[...] = (y + b_ref[...]).astype(o_ref.dtype)


def _pick_s_tile(S, max_tile=1024):
    """Largest seq tile <= max_tile that evenly divides S (prefer multiples of 128)."""
    if S <= max_tile:
        return S
    for t in range((max_tile // 128) * 128, 0, -128):
        if S % t == 0:
            return t
    for t in range(max_tile, 0, -1):
        if S % t == 0:
            return t
    return S


def projection_net_forward(enc_output, w1, b1, w2, b2, *, max_s_tile=1024):
    """enc_output: (B, input_dim, S) -> (B, output_dim, S).

    w1: (input_dim, d_hidn)   b1: (d_hidn,)
    w2: (d_hidn, output_dim)  b2: (output_dim,)
    (weights are the transpose of the PyTorch nn.Linear weight layout)
    """
    B, input_dim, S = enc_output.shape
    output_dim = w2.shape[1]

    # Fold the two linear layers (no nonlinearity between fc1 and fc2) into a
    # single affine map; these are tiny matrices, a trivial XLA op.
    w_eff_t = (w1 @ w2).T.astype(enc_output.dtype)            # (output_dim, input_dim)
    b_eff = (b1 @ w2 + b2).reshape(output_dim, 1).astype(jnp.float32)

    s_tile = _pick_s_tile(S, max_s_tile)
    grid = (B, S // s_tile)

    itemsize = jnp.dtype(enc_output.dtype).itemsize
    cost = pl.CostEstimate(
        flops=2 * B * S * input_dim * output_dim,
        transcendentals=0,
        bytes_accessed=(B * S * (input_dim + output_dim) * itemsize
                        + w_eff_t.size * itemsize
                        + b_eff.size * 4),
    )

    return pl.pallas_call(
        _projection_kernel,
        out_shape=jax.ShapeDtypeStruct((B, output_dim, S), enc_output.dtype),
        grid_spec=pltpu.PrefetchScalarGridSpec(
            num_scalar_prefetch=0,
            grid=grid,
            in_specs=[
                # activations: batch squeezed out, S_tile on the lane axis
                pl.BlockSpec((pl.Squeezed(), input_dim, s_tile),
                             lambda b, s: (b, 0, s)),
                # folded weight / bias: pinned (same block every grid step)
                pl.BlockSpec((output_dim, input_dim), lambda b, s: (0, 0)),
                pl.BlockSpec((output_dim, 1), lambda b, s: (0, 0)),
            ],
            out_specs=pl.BlockSpec((pl.Squeezed(), output_dim, s_tile),
                                   lambda b, s: (b, 0, s)),
        ),
        compiler_params=pltpu.CompilerParams(
            dimension_semantics=("parallel", "parallel"),
        ),
        cost_estimate=cost,
    )(enc_output, w_eff_t, b_eff)


def _init_linear(key, fan_in, fan_out):
    """Deterministic init mirroring nn.Linear's U(-1/sqrt(fan_in), 1/sqrt(fan_in)).

    Returns weight of shape (fan_in, fan_out) (i.e. PyTorch W^T) and bias (fan_out,).
    """
    kw, kb = jax.random.split(key)
    bound = 1.0 / math.sqrt(fan_in)
    w = jax.random.uniform(kw, (fan_in, fan_out), jnp.float32, -bound, bound)
    b = jax.random.uniform(kb, (fan_out,), jnp.float32, -bound, bound)
    return w, b


if __name__ == "__main__":
    # Small shapes consistent with the module: args.input_size=16, d_hidn=32,
    # args.output_size=8; enc_output is (batch, input_size, seq).
    B, input_dim, S = 2, 16, 8
    d_hidn, output_dim = 32, 8

    key = jax.random.PRNGKey(0)
    kx, k1, k2 = jax.random.split(key, 3)

    enc_output = jax.random.normal(kx, (B, input_dim, S), jnp.float32)
    w1, b1 = _init_linear(k1, input_dim, d_hidn)
    w2, b2 = _init_linear(k2, d_hidn, output_dim)

    out = projection_net_forward(enc_output, w1, b1, w2, b2)
    out = jax.block_until_ready(out)

    # Pure-JAX reference of the (unfused) PyTorch forward.
    x_t = jnp.transpose(enc_output, (0, 2, 1))
    ref = jnp.transpose((x_t @ w1 + b1) @ w2 + b2, (0, 2, 1))

    assert out.shape == (B, output_dim, S), out.shape
    assert jnp.allclose(out, ref, atol=1e-5, rtol=1e-5), "mismatch vs reference"

    print("KERNEL_OK")
</pallas_src>

<mosaic_0001>
module attributes {stable_mosaic.version = 11 : i64} {
  func.func @_projection_kernel(%arg0: i32, %arg1: i32, %arg2: memref<1x16x8xf32, #tpu.memory_space<vmem>>, %arg3: memref<8x16xf32, #tpu.memory_space<vmem>>, %arg4: memref<8x1xf32, #tpu.memory_space<vmem>>, %arg5: memref<1x8x8xf32, #tpu.memory_space<vmem>>) attributes {dimension_semantics = [#tpu.dimension_semantics<parallel>, #tpu.dimension_semantics<parallel>], iteration_bounds = array<i64: 2, 1>, scalar_prefetch = 0 : i64, scratch_operands = 0 : i64, tpu.core_type = #tpu.core_type<tc>, window_params = [{transform_indices = @transform_0, window_bounds = array<i64: 1, 16, 8>}, {pipeline_mode = #tpu.pipeline_mode<synchronous>, transform_indices = @transform_1, window_bounds = array<i64: 8, 16>}, {pipeline_mode = #tpu.pipeline_mode<synchronous>, transform_indices = @transform_2, window_bounds = array<i64: 8, 1>}, {transform_indices = @transform_3, window_bounds = array<i64: 1, 8, 8>}]} {
    %c0 = arith.constant 0 : index
    %c0_0 = arith.constant 0 : index
    %0 = vector.load %arg3[%c0, %c0_0] : memref<8x16xf32, #tpu.memory_space<vmem>>, vector<8x16xf32>
    %c0_1 = arith.constant 0 : index
    %c0_2 = arith.constant 0 : index
    %c0_3 = arith.constant 0 : index
    %1 = vector.load %arg2[%c0_1, %c0_2, %c0_3] : memref<1x16x8xf32, #tpu.memory_space<vmem>>, vector<1x16x8xf32>
    %2 = vector.shape_cast %1 : vector<1x16x8xf32> to vector<16x8xf32>
    %cst = arith.constant dense<0.000000e+00> : vector<8x8xf32>
    %3 = tpu.matmul %0, %2, %cst {dimension_numbers = #tpu.dot_dimension_numbers<[1], [0], [0], [1], [0, 0, 1, 1], [], []>} : vector<8x16xf32>, vector<16x8xf32>, vector<8x8xf32> -> vector<8x8xf32>
    %c0_4 = arith.constant 0 : index
    %c0_5 = arith.constant 0 : index
    %4 = vector.load %arg4[%c0_4, %c0_5] : memref<8x1xf32, #tpu.memory_space<vmem>>, vector<8x1xf32>
    %5 = vector.broadcast %4 : vector<8x1xf32> to vector<8x8xf32>
    %6 = arith.addf %3, %5 : vector<8x8xf32>
    %c0_6 = arith.constant 0 : index
    %c0_7 = arith.constant 0 : index
    %c0_8 = arith.constant 0 : index
    %7 = vector.load %arg5[%c0_6, %c0_7, %c0_8] : memref<1x8x8xf32, #tpu.memory_space<vmem>>, vector<1x8x8xf32>
    %8 = vector.shape_cast %7 : vector<1x8x8xf32> to vector<8x8xf32>
    %9 = vector.shape_cast %6 : vector<8x8xf32> to vector<1x8x8xf32>
    tpu.vector_store %arg5[%c0_6, %c0_7, %c0_8], %9 {strides = array<i32>} : memref<1x8x8xf32, #tpu.memory_space<vmem>>, vector<1x8x8xf32>,
    return
  }
  func.func @transform_0(%arg0: i32, %arg1: i32) -> (i32, i32, i32) {
    %c0_i32 = arith.constant 0 : i32
    %c0_i32_0 = arith.constant 0 : i32
    return %arg0, %c0_i32, %arg1 : i32, i32, i32
  }
  func.func @transform_1(%arg0: i32, %arg1: i32) -> (i32, i32) {
    %c0_i32 = arith.constant 0 : i32
    %c0_i32_0 = arith.constant 0 : i32
    %c0_i32_1 = arith.constant 0 : i32
    return %c0_i32, %c0_i32_0 : i32, i32
  }
  func.func @transform_2(%arg0: i32, %arg1: i32) -> (i32, i32) {
    %c0_i32 = arith.constant 0 : i32
    %c0_i32_0 = arith.constant 0 : i32
    %c0_i32_1 = arith.constant 0 : i32
    return %c0_i32, %c0_i32_0 : i32, i32
  }
  func.func @transform_3(%arg0: i32, %arg1: i32) -> (i32, i32, i32) {
    %c0_i32 = arith.constant 0 : i32
    %c0_i32_0 = arith.constant 0 : i32
    return %arg0, %c0_i32, %arg1 : i32, i32, i32
  }
}

</mosaic_0001>

<bundles_post_ra>
// kernel: tpu_custom_call.1
= control target key start
LH: loop header
LB: loop body
LE: loop exit
PB: predicated region body
PF: predicated region fallthrough
CT: control target
= control target key end

     0   :  { %8 = vsyncpa [#allocation3], 0  ;;  %s664_s0 = inlined_call_operand.vmem [shape: f32[2,16,8], index: 0, kind: input, shape index: {}]   ;;  %s665_s1 = inlined_call_operand.vmem [shape: f32[8,16], index: 1, kind: input, shape index: {}]   ;;  %s666_s2 = inlined_call_operand.vmem [shape: f32[8,1], index: 2, kind: input, shape index: {}]   ;;  %s667_s3 = inlined_call_operand.hbm [shape: f32[2,8,8], index: 3, kind: output, shape index: {}]  }
   0x1   :  { %10 = vsyncpa [#allocation3 + $0x1], 0  ;;  %s553_s12 = smov 0   ;;  %s555_s13 = smov 0  }
   0x2   :  { %s557_s14 = smov 0   ;;  %s559_s15 = smov 0  }
   0x3   :  { %s561_s16 = smov 0   ;;  %s563_s17 = smov 0  }
   0x4 LB: > { %s368_s18 = sadd.s32 4294967295, %s527_s17   ;;  %s369_s19 = sadd.s32 4294967294, %s527_s17   ;;  %s527_s17 = sphi %s563_s17, %s16_s17   ;;  %s523_s16 = sphi %s561_s16, %s674_s16   ;;  %s519_s15 = sphi %s559_s15, %s673_s15   ;;  %s515_s14 = sphi %s557_s14, %s672_s14   ;;  %s511_s13 = sphi %s555_s13, %s671_s13   ;;  %s507_s12 = sphi %s553_s12, %s670_s12  }
   0x5   : > { %s28_s20 = sadd.s32 1, %s523_s16  ;;  %s107_s21 = sadd.s32 1, %s515_s14 }
   0x6   : > { %p30_p0 = scmp.ge.s32.totalorder %s28_s20, 2  ;;  %p117_p1 = scmp.ne.s32.totalorder %s515_s14, %s511_s13 }
   0x7   : > { %p118_p2 = scmp.eq.s32.totalorder %s368_s18, 1  ;;  %p123_p3 = scmp.ne.s32.totalorder %s511_s13, %s507_s12 }
   0x8   : > { %s676_s20 = smov (%p30_p0, %s28_s20), 0  ;;  %p124_p5 = scmp.eq.s32.totalorder %s369_s19, 1 }
   0x9   : > { %p593_p4 = por %p118_p2, %p117_p1  ;;  %s102_s23 = ssub.s32 %s523_s16, %s676_s20 }
   0xa   : > { %p372_p6 = scmp.ge.s32.totalorder %s527_s17, 1  ;;  %p105_p7 = scmp.eq.s32.totalorder %s102_s23, 0 }
   0xb   : > { %p600_p8 = por %p124_p5, %p123_p3  ;;  %p159_p9 = scmp.lt.s32.totalorder %s527_s17, 3 }
   0xc   : > { %s606_s25 = scalar_select %p105_p7, %s515_s14, %s107_s21  }
   0xd   : > { %p160_p10 = pnand %p372_p6, %p159_p9 }
   0xe   : > { %p186_p11 = scmp.lt.s32.totalorder (!%p160_p10), %s519_s15, 1  ;;  %s183_s8 = sand.u32 (!%p160_p10), 1, %s511_s13  }
   0xf   : > { %163 = sbr.rel (%p160_p10) target bundleno = 236 (0xec), region = 32  ;;  %s373_s9 = sshll.u32 (!%p160_p10), %s183_s8, 3 }
  0x10   : > { %s378_s10 = sshll.u32 (!%p160_p10), %s519_s15, 7  ;;  %s185_s11 = scalar_lea.vmem (!%p160_p10), [#allocation2], %s373_s9 }
  0x11   : > { %s294_s18 = sshll.u32 (!%p160_p10), %s185_s11, 4  ;;  %s624_s23 = scalar_lea.hbm (!%p160_p10), %s667_s3, %s378_s10  ;;  %s295_s18 = int_to_ptr.vmem [resolvable:$true] %s294_s18 }
  0x12   : > { %s280_s26 = scalar_lea.sflag (!%p160_p10), [#allocation3], %s183_s8  ;;  %s451_s27 = scalar_lea.vmem (!%p160_p10), %s295_s18, 128 }
  0x13   : > { %p452_p12 = scmp.ne.s32.totalorder (!%p160_p10), %s295_s18, %s451_s27 }
  0x14   : > { %v529_v0 = vmov 0.0   ;;  %vm530_vm0 = vmmov 0   ;;  %v197_v1 = vld [vmem:[%s666_s2] sm:$0xff]  ;;  %s187_s28 = scalar_select %p186_p11, %s519_s15, 1  ;;  %v531_v2 = vmov 0   ;;  %vm203_vm1 = vcmask 130048  }
  0x15   : > { %385 = vmatprep.subr.mxu0 %v529_v0  ;;  %389 = vmatprep.mubr.msk.f32.mxu0 %vm530_vm0, %v529_v0  ;;  %v194_v5 = vld [vmem:[%s665_s1] sm:$0xff]  ;;  %vm277_vm2 = vcmask 64512   ;;  %p453_p13 = pnand %p452_p12, %p593_p4  ;;  %s532_s15 = smov [#allocation2]  }
  0x16   : > { %450 = vset.pattern.permute.xlu0 %v531_v2  ;;  %s381_s29 = sshll.u32 %s187_s28, 4  ;;  %s455_s28 = sshll.u32 %s532_s15, 4  ;;  %s456_s28 = int_to_ptr.vmem [resolvable:$false] %s455_s28 }
  0x17   : > { %200 = vperm.xlu0 %450, %v197_v1   ;;  %s193_s5 = scalar_lea.vmem %s664_s0, %s381_s29  ;;  %p454_p0 = pneg %p453_p13 }
  0x18   : > { %v196_v3 = vld [vmem:[%s193_s5 + $0x8] sm:$0xff]  ;;  %v195_v4 = vld [vmem:[%s193_s5] sm:$0xff]  ;;  %s457_s29 = scalar_lea.vmem %s456_s28, 256  ;;  %p458_p1 = scmp.lt.s32.totalorder %s295_s18, %s456_s28 }
  0x19   : > { %386 = vmatpush3.msra.mxu0 %v196_v3  ;;  %p459_p2 = scmp.lt.s32.totalorder %s457_s29, %s451_s27 }
  0x1a   : > { %387 = vmatprep.subr.mxu0 %v529_v0 }
  0x1b   : > { %388 = vmatpush3.msra.mxu0 %v195_v4  ;;  %p460_p3 = por %p459_p2, %p458_p1 }
  0x1c   : > { %390 = vmatmul.mubr.msk.f32.vlgmr.msra.gmra.mxu0 %vm203_vm1, %v194_v5 }
  0x1d   : > { %p461_p5 = pnand %p460_p3, %p454_p0 }
  0x92   : > { %v201_v6 = vpop.permute.xlu0 %200 }
  0xdc   : > { %v273_v7 = vpop.f32.mrf.mxu0 }
  0xdd   : > { %v274_v8 = vadd.f32 %v273_v7, %v201_v6 }
  0xde   : > { %v391_v9 = vpop.f32.mrf.mxu0 }
  0xdf   : > { %278 = vst.msk [vmem:[%s185_s11] sm:$0xff] %vm277_vm2, %v274_v8 }
  0xe0   : > { %464 = shalt.err (!%p461_p5)
}
  0xe1   : > { %s465_s30 = scalar_lea.hbm %s624_s23, 128  ;;  %s469_s6 = scalar_lea.hbm %s667_s3, 256 }
  0xe2   : > { %p466_p6 = scmp.ne.s32.totalorder %s624_s23, %s465_s30  ;;  %p470_p10 = scmp.lt.s32.totalorder %s624_s23, %s667_s3 }
  0xe3   : > { %p471_p11 = scmp.lt.s32.totalorder %s469_s6, %s465_s30 }
  0xe4   : > { %p467_p7 = pnand %p466_p6, %p593_p4 }
  0xe5   : > { %p472_p12 = por %p471_p11, %p470_p10 }
  0xe6   : > { %p468_p9 = pneg %p467_p7 }
  0xe8   : > { %p473_p13 = pnand %p472_p12, %p468_p9 }
  0xea   : > { %476 = shalt.err (!%p473_p13)
}
  0xeb   : > { %392 = dma.vmem_to_hbm [thread:$0]  (%p593_p4), %s295_s18, 128, %s624_s23, %s280_s26  }
  0xec PF: > { %p398_p0 = scmp.ge.s32.totalorder %s527_s17, 2  ;;  %s306_s9 = sand.u32 1, %s507_s12  }
  0xed   : > { %s307_s10 = scalar_lea.sflag [#allocation3], %s306_s9 }
  0xee   : > { %p395_p1 = pnand %p398_p0, %p600_p8 }
  0xf0   : > { %p396_p2 = pneg %p395_p1 }
  0xf2   : > { %502 = dma.done.wait (%p396_p2), %s307_s10, 128  }
  0xf3   : > { %504 = vsyncadd (%p396_p2), %s307_s10, 4294967168  ;;  %s16_s17 = sadd.s32 1, %s527_s17   ;;  %s670_s12 = smov %s511_s13 }
  0xf4   : > { %p13_p3 = scmp.ge.s32.totalorder %s16_s17, 4   ;;  %s671_s13 = smov %s515_s14 }
  0xf5   : > { %s672_s14 = smov %s606_s25  ;;  %s673_s15 = smov %s523_s16 }
  0xf6   : > { %s674_s16 = smov %s676_s20  ;;  %15 = sbr.rel (!%p13_p3) target bundleno = 4 (0x4), region = 67 }
  0xfb   :  { %312 = vsyncpa [#allocation3], 1 }
  0xfc   :  { %314 = vsyncpa [#allocation3 + $0x1], 1 }

</bundles_post_ra>
